<compile_context>
chip_gen: v6e
topology: v6e:2x2x1
jax: 0.10.0
libtpu: 0.0.40
codegen_flags: <defaults>
</compile_context>

<pallas_src>
import functools

import jax
import jax.numpy as jnp
from jax.experimental import pallas as pl
from jax.experimental.pallas import tpu as pltpu

EPS = 1e-5


# --------------------------------------------------------------------------
# Pallas kernel: fused attention gate on a [C, spatial_tile] block
# --------------------------------------------------------------------------
def _attn_gate_kernel(g_ref, x_ref, wg_ref, wx_ref, b_ref, wpsi_ref, bpsi_ref,
                      o_ref, *, psi_on_mxu):
    """Layout: channels on sublanes, spatial on lanes.

      g_ref    : [Cg, T]
      x_ref    : [Cl, T]
      wg_ref   : [Fi, Cg]   (BN-folded)
      wx_ref   : [Fi, Cl]   (BN-folded)
      b_ref    : [Fi, 1]    (bg + bx, BN-folded)
      wpsi_ref : [1, Fi] (MXU path) or [Fi, 1] (VPU path), BN-folded
      bpsi_ref : [1] scalar in SMEM
      o_ref    : [Cl, T]
    """
    x = x_ref[...]
    # Two MXU pushes into one f32 accumulator — no in-kernel concat copy.
    a = jnp.dot(wg_ref[...], g_ref[...], preferred_element_type=jnp.float32)
    a = a + jnp.dot(wx_ref[...], x, preferred_element_type=jnp.float32)
    a = jnp.maximum(a + b_ref[...], 0.0)                         # [Fi, T]
    if psi_on_mxu:
        # Fi large: route through the MXU (it has plenty of slack here).
        psi = jnp.dot(wpsi_ref[...], a, preferred_element_type=jnp.float32)
    else:
        # Fi tiny: VPU multiply + sublane (XLU) reduce beats a degenerate matmul.
        psi = jnp.sum(a * wpsi_ref[...], axis=0, keepdims=True)
    psi = jax.nn.sigmoid(psi + bpsi_ref[0])                      # [1, T], lane-dense
    o_ref[...] = (x.astype(jnp.float32) * psi).astype(o_ref.dtype)


# --------------------------------------------------------------------------
# Tile selection helpers (generation-aware)
# --------------------------------------------------------------------------
def _tpu_vmem_capacity_bytes():
    try:
        return int(pltpu.get_tpu_info().vmem_capacity_bytes)
    except Exception:
        return 64 * 1024 * 1024        # conservative (v7x per-core VMEM)


def _is_multi_tensorcore():
    try:
        return "v7" in jax.devices()[0].device_kind.lower()
    except Exception:
        return False


def _pick_tile(N, HW, cg, cl, fi, io_itemsize, multi_tc, vmem_budget,
               max_tile=32768):
    """Lane-dense spatial tile (multiple of 128).

    Single-TC chips (v5e/v6e): one tile as large as the VMEM budget allows —
    extra grid steps are pure per-step overhead there.  Multi-TC (v7x): keep
    >= 2 parallel grid steps, splitting along N first (long contiguous DMAs)
    and only splitting the spatial axis when N == 1.
    """
    hw128 = 128 * pl.cdiv(HW, 128)
    # double-buffered in/out blocks + f32 relu activation, per output lane
    per_lane = 2 * (cg + 2 * cl) * io_itemsize + 4 * fi
    tile_budget = max(128, 128 * (vmem_budget // (per_lane * 128)))
    tile = min(hw128, max_tile, tile_budget)
    tile = 128 * max(1, tile // 128)
    if multi_tc and N * pl.cdiv(hw128, tile) < 2 and hw128 >= 256:
        tile = 128 * pl.cdiv(hw128 // 128, 2)   # 2 spatial steps for the 2 TCs
    return tile


# --------------------------------------------------------------------------
# Wrapper
# --------------------------------------------------------------------------
def attention_gate_forward(g_nchw, x_nchw, params, *, tile=None, io_dtype=None):
    """AttentionGate.forward(g, x) with eval-mode BN folded into `params`.

    params = (wg [Fi,Cg], wx [Fi,Cl], b_comb [Fi,1], wpsi [Fi], bpsi [1]).
    NCHW in / NCHW out — channels-in-sublane, lane-dense spatial layout, so only
    free (N,C,H,W)<->(N,C,H*W) reshapes: no transposes and no host-side padding.
    Set io_dtype=jnp.bfloat16 for the ~2x HBM-roofline bf16 I/O path (v6e/v7x).
    """
    wg, wx, b_comb, wpsi, bpsi = params
    N, Cg, H, W = g_nchw.shape
    Cl = x_nchw.shape[1]
    Fi = wg.shape[0]
    HW = H * W

    g3 = g_nchw.reshape(N, Cg, HW)
    x3 = x_nchw.reshape(N, Cl, HW)
    if io_dtype is not None:
        g3 = g3.astype(io_dtype)
        x3 = x3.astype(io_dtype)
    out_dtype = x3.dtype
    itemsize = jnp.dtype(out_dtype).itemsize

    multi_tc = _is_multi_tensorcore()
    vmem_cap = _tpu_vmem_capacity_bytes()
    if tile is None:
        tile = _pick_tile(N, HW, Cg, Cl, Fi, itemsize, multi_tc,
                          vmem_budget=int(vmem_cap * 0.6))
    # Never exceed the full spatial extent; tile == HW hits the
    # "block dim equals full array dim" exemption from the 128-lane rule.
    tile = min(tile, HW)
    grid = (N, pl.cdiv(HW, tile))     # ragged boundary block handled by Pallas

    psi_on_mxu = Fi >= 64
    wpsi2 = wpsi.reshape(1, Fi) if psi_on_mxu else wpsi.reshape(Fi, 1)
    bpsi1 = bpsi.reshape(1)

    footprint = (2 * (Cg + 2 * Cl) * tile * itemsize    # double-buffered I/O blocks
                 + 4 * Fi * tile                        # f32 relu activation
                 + 4 * (Fi * (Cg + Cl) + 2 * Fi)        # weights/biases
                 + 4 * tile)                            # psi row
    vmem_limit = int(min(vmem_cap, max(32 * 1024 * 1024, 2 * footprint)))

    cost = pl.CostEstimate(
        flops=2 * N * HW * Fi * (Cg + Cl + 1) + 4 * N * HW * Cl,
        transcendentals=N * HW,
        bytes_accessed=N * HW * (Cg + 2 * Cl) * itemsize
                       + 4 * (Fi * (Cg + Cl) + 2 * Fi + 1),
    )

    kernel = functools.partial(_attn_gate_kernel, psi_on_mxu=psi_on_mxu)

    out = pl.pallas_call(
        kernel,
        out_shape=jax.ShapeDtypeStruct((N, Cl, HW), out_dtype),
        grid=grid,
        in_specs=[
            pl.BlockSpec((None, Cg, tile), lambda n, t: (n, 0, t)),
            pl.BlockSpec((None, Cl, tile), lambda n, t: (n, 0, t)),
            pl.BlockSpec((Fi, Cg), lambda n, t: (0, 0)),
            pl.BlockSpec((Fi, Cl), lambda n, t: (0, 0)),
            pl.BlockSpec((Fi, 1), lambda n, t: (0, 0)),
            pl.BlockSpec(wpsi2.shape, lambda n, t: (0, 0)),
            pl.BlockSpec(memory_space=pltpu.MemorySpace.SMEM),   # bpsi scalar
        ],
        out_specs=pl.BlockSpec((None, Cl, tile), lambda n, t: (n, 0, t)),
        compiler_params=pltpu.CompilerParams(
            dimension_semantics=("parallel", "parallel"),
            vmem_limit_bytes=vmem_limit),
        cost_estimate=cost,
    )(g3, x3, wg, wx, b_comb, wpsi2, bpsi1)

    return out.reshape(N, Cl, H, W)


# --------------------------------------------------------------------------
# Host-side BN folding (eval mode) of raw PyTorch-style parameters
# --------------------------------------------------------------------------
def fold_attention_gate_params(raw):
    """raw 1x1-conv weights are 2D [Cout, Cin]; BN tuples = (gamma, beta, mean, var)."""
    def fold(gamma, beta, mean, var):
        s = gamma / jnp.sqrt(var + EPS)
        return s, beta - mean * s

    sg, hg = fold(*raw['wg_bn'])
    sx, hx = fold(*raw['wx_bn'])
    sp, hp = fold(*raw['psi_bn'])

    wg = raw['wg_w'] * sg[:, None]                          # [Fi, Cg]
    wx = raw['wx_w'] * sx[:, None]                          # [Fi, Cl]
    b_comb = (raw['wg_b'] * sg + hg + raw['wx_b'] * sx + hx)[:, None]   # [Fi, 1]
    wpsi = raw['psi_w'][0] * sp[0]                          # [Fi]
    bpsi = raw['psi_b'] * sp + hp                           # [1]
    return wg, wx, b_comb, wpsi, bpsi


# --------------------------------------------------------------------------
# Pure-JAX reference (NCHW, raw params, eval-mode BN) for validation
# --------------------------------------------------------------------------
def _conv1x1_nchw(x, w, b):
    return jnp.einsum('oc,nchw->nohw', w, x) + b[None, :, None, None]


def _bn_eval_nchw(x, gamma, beta, mean, var):
    return ((x - mean[None, :, None, None]) /
            jnp.sqrt(var[None, :, None, None] + EPS)) * gamma[None, :, None, None] \
           + beta[None, :, None, None]


def ref_attention_gate(g, x, raw):
    g1 = _bn_eval_nchw(_conv1x1_nchw(g, raw['wg_w'], raw['wg_b']), *raw['wg_bn'])
    x1 = _bn_eval_nchw(_conv1x1_nchw(x, raw['wx_w'], raw['wx_b']), *raw['wx_bn'])
    a = jnp.maximum(g1 + x1, 0.0)
    psi = jax.nn.sigmoid(
        _bn_eval_nchw(_conv1x1_nchw(a, raw['psi_w'], raw['psi_b']), *raw['psi_bn']))
    return x * psi


# --------------------------------------------------------------------------
if __name__ == "__main__":
    key = jax.random.PRNGKey(0)
    N = 2
    F_g = F_l = 8          # gating / skip channel counts
    F_int = 4              # intermediate channels
    H = W = 16

    keys = iter(jax.random.split(key, 32))

    def nrm(shape, s=0.1):
        return s * jax.random.normal(next(keys), shape, jnp.float32)

    g = jax.random.normal(next(keys), (N, F_g, H, W), jnp.float32)
    x = jax.random.normal(next(keys), (N, F_l, H, W), jnp.float32)

    def bn_params(c):
        # (gamma, beta, running_mean, running_var) — eval-mode BN
        return (1.0 + nrm((c,)), nrm((c,)), nrm((c,), 0.05), 1.0 + jnp.abs(nrm((c,))))

    raw = dict(
        wg_w=nrm((F_int, F_g)), wg_b=nrm((F_int,)), wg_bn=bn_params(F_int),
        wx_w=nrm((F_int, F_l)), wx_b=nrm((F_int,)), wx_bn=bn_params(F_int),
        psi_w=nrm((1, F_int)), psi_b=nrm((1,)), psi_bn=bn_params(1),
    )

    params = fold_attention_gate_params(raw)

    out = jax.jit(attention_gate_forward)(g, x, params)
    out = jax.block_until_ready(out)

    ref = ref_attention_gate(g, x, raw)
    assert out.shape == (N, F_l, H, W), out.shape
    assert bool(jnp.all(jnp.isfinite(out)))
    max_err = float(jnp.max(jnp.abs(out - ref)))
    assert max_err < 1e-3, f"mismatch vs reference: {max_err}"

    print("KERNEL_OK")
</pallas_src>

<mosaic_0001>
module attributes {stable_mosaic.version = 11 : i64} {
  func.func @_attn_gate_kernel(%arg0: i32, %arg1: i32, %arg2: memref<1x8x256xf32, #tpu.memory_space<vmem>>, %arg3: memref<1x8x256xf32, #tpu.memory_space<vmem>>, %arg4: memref<4x8xf32, #tpu.memory_space<vmem>>, %arg5: memref<4x8xf32, #tpu.memory_space<vmem>>, %arg6: memref<4x1xf32, #tpu.memory_space<vmem>>, %arg7: memref<4x1xf32, #tpu.memory_space<vmem>>, %arg8: memref<1xf32, #tpu.memory_space<smem>>, %arg9: memref<1x8x256xf32, #tpu.memory_space<vmem>>) attributes {dimension_semantics = [#tpu.dimension_semantics<parallel>, #tpu.dimension_semantics<parallel>], iteration_bounds = array<i64: 2, 1>, scalar_prefetch = 0 : i64, scratch_operands = 0 : i64, tpu.core_type = #tpu.core_type<tc>, window_params = [{transform_indices = @transform_0, window_bounds = array<i64: 1, 8, 256>}, {transform_indices = @transform_1, window_bounds = array<i64: 1, 8, 256>}, {pipeline_mode = #tpu.pipeline_mode<synchronous>, transform_indices = @transform_2, window_bounds = array<i64: 4, 8>}, {pipeline_mode = #tpu.pipeline_mode<synchronous>, transform_indices = @transform_3, window_bounds = array<i64: 4, 8>}, {pipeline_mode = #tpu.pipeline_mode<synchronous>, transform_indices = @transform_4, window_bounds = array<i64: 4, 1>}, {pipeline_mode = #tpu.pipeline_mode<synchronous>, transform_indices = @transform_5, window_bounds = array<i64: 4, 1>}, {transform_indices = @transform_6, window_bounds = array<i64: 1>}, {transform_indices = @transform_7, window_bounds = array<i64: 1, 8, 256>}]} {
    %c0 = arith.constant 0 : index
    %c0_0 = arith.constant 0 : index
    %c0_1 = arith.constant 0 : index
    %0 = vector.load %arg3[%c0, %c0_0, %c0_1] : memref<1x8x256xf32, #tpu.memory_space<vmem>>, vector<1x8x256xf32>
    %1 = vector.shape_cast %0 : vector<1x8x256xf32> to vector<8x256xf32>
    %c0_2 = arith.constant 0 : index
    %c0_3 = arith.constant 0 : index
    %2 = vector.load %arg4[%c0_2, %c0_3] : memref<4x8xf32, #tpu.memory_space<vmem>>, vector<4x8xf32>
    %c0_4 = arith.constant 0 : index
    %c0_5 = arith.constant 0 : index
    %c0_6 = arith.constant 0 : index
    %3 = vector.load %arg2[%c0_4, %c0_5, %c0_6] : memref<1x8x256xf32, #tpu.memory_space<vmem>>, vector<1x8x256xf32>
    %4 = vector.shape_cast %3 : vector<1x8x256xf32> to vector<8x256xf32>
    %cst = arith.constant dense<0.000000e+00> : vector<4x256xf32>
    %5 = tpu.matmul %2, %4, %cst {dimension_numbers = #tpu.dot_dimension_numbers<[1], [0], [0], [1], [0, 0, 1, 1], [], []>} : vector<4x8xf32>, vector<8x256xf32>, vector<4x256xf32> -> vector<4x256xf32>
    %c0_7 = arith.constant 0 : index
    %c0_8 = arith.constant 0 : index
    %6 = vector.load %arg5[%c0_7, %c0_8] : memref<4x8xf32, #tpu.memory_space<vmem>>, vector<4x8xf32>
    %cst_9 = arith.constant dense<0.000000e+00> : vector<4x256xf32>
    %7 = tpu.matmul %6, %1, %cst_9 {dimension_numbers = #tpu.dot_dimension_numbers<[1], [0], [0], [1], [0, 0, 1, 1], [], []>} : vector<4x8xf32>, vector<8x256xf32>, vector<4x256xf32> -> vector<4x256xf32>
    %8 = arith.addf %5, %7 : vector<4x256xf32>
    %c0_10 = arith.constant 0 : index
    %c0_11 = arith.constant 0 : index
    %9 = vector.load %arg6[%c0_10, %c0_11] : memref<4x1xf32, #tpu.memory_space<vmem>>, vector<4x1xf32>
    %10 = vector.broadcast %9 : vector<4x1xf32> to vector<4x256xf32>
    %11 = arith.addf %8, %10 : vector<4x256xf32>
    %cst_12 = arith.constant 0.000000e+00 : f32
    %12 = vector.broadcast %cst_12 : f32 to vector<4x256xf32>
    %13 = arith.maximumf %11, %12 : vector<4x256xf32>
    %c0_13 = arith.constant 0 : index
    %c0_14 = arith.constant 0 : index
    %14 = vector.load %arg7[%c0_13, %c0_14] : memref<4x1xf32, #tpu.memory_space<vmem>>, vector<4x1xf32>
    %15 = vector.broadcast %14 : vector<4x1xf32> to vector<4x256xf32>
    %16 = arith.mulf %13, %15 : vector<4x256xf32>
    %cst_15 = arith.constant dense<0.000000e+00> : vector<256xf32>
    %17 = vector.multi_reduction <add>, %16, %cst_15 [0] : vector<4x256xf32> to vector<256xf32>
    %18 = vector.shape_cast %17 : vector<256xf32> to vector<1x256xf32>
    %c0_16 = arith.constant 0 : index
    %19 = memref.load %arg8[%c0_16] : memref<1xf32, #tpu.memory_space<smem>>
    %20 = vector.broadcast %19 : f32 to vector<1x256xf32>
    %21 = arith.addf %18, %20 : vector<1x256xf32>
    %22 = arith.negf %21 : vector<1x256xf32>
    %23 = math.exp %22 : vector<1x256xf32>
    %cst_17 = arith.constant 1.000000e+00 : f32
    %24 = vector.broadcast %cst_17 : f32 to vector<1x256xf32>
    %25 = arith.addf %24, %23 : vector<1x256xf32>
    %26 = arith.divf %24, %25 : vector<1x256xf32>
    %27 = vector.broadcast %26 : vector<1x256xf32> to vector<8x256xf32>
    %28 = arith.mulf %1, %27 : vector<8x256xf32>
    %c0_18 = arith.constant 0 : index
    %c0_19 = arith.constant 0 : index
    %c0_20 = arith.constant 0 : index
    %29 = vector.load %arg9[%c0_18, %c0_19, %c0_20] : memref<1x8x256xf32, #tpu.memory_space<vmem>>, vector<1x8x256xf32>
    %30 = vector.shape_cast %29 : vector<1x8x256xf32> to vector<8x256xf32>
    %31 = vector.shape_cast %28 : vector<8x256xf32> to vector<1x8x256xf32>
    tpu.vector_store %arg9[%c0_18, %c0_19, %c0_20], %31 {strides = array<i32>} : memref<1x8x256xf32, #tpu.memory_space<vmem>>, vector<1x8x256xf32>,
    return
  }
  func.func @transform_0(%arg0: i32, %arg1: i32) -> (i32, i32, i32) {
    %c0_i32 = arith.constant 0 : i32
    %c0_i32_0 = arith.constant 0 : i32
    return %arg0, %c0_i32, %arg1 : i32, i32, i32
  }
  func.func @transform_1(%arg0: i32, %arg1: i32) -> (i32, i32, i32) {
    %c0_i32 = arith.constant 0 : i32
    %c0_i32_0 = arith.constant 0 : i32
    return %arg0, %c0_i32, %arg1 : i32, i32, i32
  }
  func.func @transform_2(%arg0: i32, %arg1: i32) -> (i32, i32) {
    %c0_i32 = arith.constant 0 : i32
    %c0_i32_0 = arith.constant 0 : i32
    %c0_i32_1 = arith.constant 0 : i32
    return %c0_i32, %c0_i32_0 : i32, i32
  }
  func.func @transform_3(%arg0: i32, %arg1: i32) -> (i32, i32) {
    %c0_i32 = arith.constant 0 : i32
    %c0_i32_0 = arith.constant 0 : i32
    %c0_i32_1 = arith.constant 0 : i32
    return %c0_i32, %c0_i32_0 : i32, i32
  }
  func.func @transform_4(%arg0: i32, %arg1: i32) -> (i32, i32) {
    %c0_i32 = arith.constant 0 : i32
    %c0_i32_0 = arith.constant 0 : i32
    %c0_i32_1 = arith.constant 0 : i32
    return %c0_i32, %c0_i32_0 : i32, i32
  }
  func.func @transform_5(%arg0: i32, %arg1: i32) -> (i32, i32) {
    %c0_i32 = arith.constant 0 : i32
    %c0_i32_0 = arith.constant 0 : i32
    %c0_i32_1 = arith.constant 0 : i32
    return %c0_i32, %c0_i32_0 : i32, i32
  }
  func.func @transform_6(%arg0: i32, %arg1: i32) -> i32 {
    %c0_i32 = arith.constant 0 : i32
    %c0_i32_0 = arith.constant 0 : i32
    return %c0_i32 : i32
  }
  func.func @transform_7(%arg0: i32, %arg1: i32) -> (i32, i32, i32) {
    %c0_i32 = arith.constant 0 : i32
    %c0_i32_0 = arith.constant 0 : i32
    return %arg0, %c0_i32, %arg1 : i32, i32, i32
  }
}

</mosaic_0001>

<bundles_post_ra>
// kernel: attention_gate_forward.1
= control target key start
LH: loop header
LB: loop body
LE: loop exit
PB: predicated region body
PF: predicated region fallthrough
CT: control target
= control target key end

     0   :  { %s792_s26 = smov 0   ;;  %s794_s27 = smov 0   ;;  %s845_s0 = inlined_call_operand.vmem [shape: f32[2,8,256], index: 0, kind: input, shape index: {}]   ;;  %s846_s1 = inlined_call_operand.vmem [shape: f32[2,8,256], index: 1, kind: input, shape index: {}]   ;;  %s847_s2 = inlined_call_operand.vmem [shape: f32[4,8], index: 2, kind: input, shape index: {}]   ;;  %s848_s3 = inlined_call_operand.vmem [shape: f32[4,8], index: 3, kind: input, shape index: {}]   ;;  %s849_s4 = inlined_call_operand.vmem [shape: f32[4,1], index: 4, kind: input, shape index: {}]   ;;  %s850_s5 = inlined_call_operand.vmem [shape: f32[4,1], index: 5, kind: input, shape index: {}]   ;;  %s851_s6 = inlined_call_operand.<no memory space> [shape: f32[1], index: 6, kind: input, shape index: {}]   ;;  %s852_s7 = inlined_call_operand.vmem [shape: f32[2,8,256], index: 7, kind: output, shape index: {}]  }
   0x1   :  { %12 = sst [smem:[#allocation2]] %s851_s6  ;;  %s796_s28 = smov 0  }
   0x2 LB: > { %s30_s6 = sadd.s32 1, %s741_s27  ;;  %p672_p0 = scmp.ge.s32.totalorder %s745_s28, 1  ;;  %s745_s28 = sphi %s796_s28, %s18_s28   ;;  %s741_s27 = sphi %s794_s27, %s854_s27   ;;  %s737_s26 = sphi %s792_s26, %s853_s26  }
   0x3   : > { %p32_p1 = scmp.ge.s32.totalorder %s30_s6, 2  ;;  %p276_p2 = scmp.lt.s32.totalorder %s745_s28, 3 }
   0x5   : > { %s856_s6 = smov (%p32_p1, %s30_s6), 0  ;;  %p277_p3 = pnand %p672_p0, %p276_p2 }
   0x6   : > { %p326_p4 = scmp.lt.s32.totalorder (!%p277_p3), %s737_s26, 1  ;;  %s543_s21 = sld [smem:[#allocation2]] (!%p277_p3) }
   0x7   : > { %280 = sbr.rel (%p277_p3) target bundleno = 272 (0x110), region = 48 }
   0xc   : > { %v747_v0 = vmov 0.0   ;;  %v510_v1 = vld [vmem:[%s849_s4] sm:$0xf]  ;;  %s858_s26 = smov (!%p326_p4, %s737_s26), 1  ;;  %v748_v2 = vmov 0   ;;  %vm361_vm0 = vcmask 64512   ;;  %v544_v35 = vstv %s543_s21 }
   0xd   : > { %429 = vmatprep.mubr.f32.mxu0 %v747_v0  ;;  %503 = vmatprep.mubr.f32.mxu1 %v747_v0  ;;  %s813_s8 = sshll.u32 %s858_s26, 4  ;;  %v520_v3 = vld [vmem:[%s850_s5] sm:$0xf]  ;;  %vm528_vm1 = vcmask 1043456  }
   0xe   : > { %714 = vset.pattern.permute.xlu0 %v748_v2  ;;  %s343_s13 = scalar_lea.vmem %s846_s1, %s813_s8  ;;  %s333_s16 = scalar_lea.vmem %s845_s0, %s813_s8  ;;  %v360_v6 = vld [vmem:[%s848_s3] sm:$0xf] }
   0xf   : > { %513 = vperm.xlu0 %714, %v510_v1   ;;  %v356_v4 = vld [vmem:[%s343_s13 + $0x8] sm:$0xff]  ;;  %v355_v5 = vld [vmem:[%s343_s13] sm:$0xff]  ;;  %s353_s24 = scalar_lea.vmem %s852_s7, %s813_s8 }
  0x10   : > { %395 = vmatprep.subr.mxu0 %v356_v4  ;;  %v359_v7 = vld [vmem:[%s333_s16 + $0x8] sm:$0xff]  ;;  %v358_v8 = vld [vmem:[%s333_s16] sm:$0xff] }
  0x11   : > { %v357_v9 = vld [vmem:[%s847_s2] sm:$0xf]  ;;  %469 = vmatprep.subr.mxu1 %v359_v7  ;;  %396 = vmatpush1.msra.mxu0 %v355_v5 }
  0x12   : > { %470 = vmatpush1.msra.mxu1 %v358_v8  ;;  %679 = vmatmul.mubr.msk.f32.vlgmr.msra.gmra.mxu0 %vm361_vm0, %v360_v6 }
  0x13   : > { %523 = vperm.xlu0 %714, %v520_v3   ;;  %680 = vmatmul.mubr.msk.f32.vlgmr.msra.gmra.mxu1 %vm361_vm0, %v357_v9 }
  0x8a   : > { %v514_v11 = vpop.permute.xlu0 %513 }
  0x8e   : > { %v524_v20 = vpop.permute.xlu0 %523 }
  0xd2   : > { %v431_v10 = vpop.f32.mrf.mxu0 }
  0xd3   : > { %v505_v12 = vpop.f32.mrf.mxu1 }
  0xd4   : > { %v506_v13 = vadd.f32 %v505_v12, %v431_v10  ;;  %v433_v14 = vpop.f32.mrf.mxu0 }
  0xd5   : > { %v507_v15 = vpop.f32.mrf.mxu1 }
  0xd6   : > { %v516_v16 = vadd.f32 %v514_v11, %v506_v13  ;;  %v508_v17 = vadd.f32 %v507_v15, %v433_v14 }
  0xd8   : > { %v517_v18 = vadd.f32 %v514_v11, %v508_v17  ;;  %v518_v19 = vmax.f32 %v516_v16, 0.0 }
  0xda   : > { %v519_v21 = vmax.f32 %v517_v18, 0.0  ;;  %v526_v22 = vmul.f32 %v524_v20, %v518_v19 }
  0xdc   : > { %v527_v23 = vmul.f32 %v524_v20, %v519_v21  ;;  %v529_v24 = vsel %vm528_vm1, %v526_v22, 0.0 }
  0xdd   : > { %v530_v25 = vrot.slane %v529_v24, 4 }
  0xde   : > { %v536_v26 = vsel %vm528_vm1, %v527_v23, 0.0 }
  0xdf   : > { %v531_v27 = vadd.f32 %v530_v25, %v529_v24  ;;  %v537_v28 = vrot.slane %v536_v26, 4 }
  0xe1   : > { %v532_v29 = vrot.slane %v531_v27, 2  ;;  %v538_v30 = vadd.f32 %v537_v28, %v536_v26 }
  0xe3   : > { %v533_v31 = vadd.f32 %v532_v29, %v531_v27  ;;  %v539_v32 = vrot.slane %v538_v30, 2 }
  0xe5   : > { %v534_v33 = vrot.slane %v533_v31, 1  ;;  %v540_v34 = vadd.f32 %v539_v32, %v538_v30 }
  0xe7   : > { %v535_v36 = vadd.f32 %v534_v33, %v533_v31  ;;  %v541_v37 = vrot.slane %v540_v34, 1 }
  0xe9   : > { %v542_v38 = vadd.f32 %v541_v37, %v540_v34  ;;  %v545_v39 = vadd.f32 %v544_v35, %v535_v36 }
  0xeb   : > { %v546_v40 = vadd.f32 %v544_v35, %v542_v38  ;;  %v681_v41 = vmul.f32 -1.442695, %v545_v39 }
  0xed   : > { %715 = vpow2.f32 %v681_v41  ;;  %v682_v42 = vmul.f32 -1.442695, %v546_v40 }
  0xef   : > { %717 = vpow2.f32 %v682_v42 }
  0xfa   : > { %v716_v43 = vpop.eup %715 }
  0xfb   : > { %v553_v44 = vadd.f32 1.0, %v716_v43 }
  0xfc   : > { %v718_v45 = vpop.eup %717 }
  0xfd   : > { %v554_v46 = vadd.f32 1.0, %v718_v45  ;;  %719 = vrcp.f32 %v553_v44 }
  0xff   : > { %721 = vrcp.f32 %v554_v46 }
 0x10a   : > { %v720_v47 = vpop.eup %719 }
 0x10b   : > { %v559_v48 = vmul.f32 %v720_v47, %v355_v5 }
 0x10c   : > { %v722_v49 = vpop.eup %721 }
 0x10d   : > { %v560_v50 = vmul.f32 %v722_v49, %v356_v4  ;;  %561 = vst [vmem:[%s353_s24] sm:$0xff] %v559_v48 }
 0x10f   : > { %562 = vst [vmem:[%s353_s24 + $0x8] sm:$0xff] %v560_v50 }
 0x110 PF: > { %s18_s28 = sadd.s32 1, %s745_s28   ;;  %s853_s26 = smov %s741_s27 }
 0x111   : > { %p15_p5 = scmp.ge.s32.totalorder %s18_s28, 4   ;;  %s854_s27 = smov %s856_s6 }
 0x113   :  { %17 = sbr.rel (!%p15_p5) target bundleno = 2 (0x2), region = 81 }

</bundles_post_ra>
